<compile_context>
chip_gen: v7x
topology: tpu7x:2x2x1
jax: 0.10.0
libtpu: 0.0.40
codegen_flags: <defaults>
</compile_context>

<pallas_src>
import jax
import jax.numpy as jnp
import numpy as np
from jax import lax
from jax.experimental import pallas as pl
from jax.experimental.pallas import tpu as pltpu

# ---- sizes (small, consistent with the module's __init__) ----
VOCAB = 20      # vocab_size
EMB = 16        # embedding_dim
HID = 32        # hidden_dim
TAGS = 8        # tagset_size
SEQ = 8         # sentence length

LANES = 4 * HID                               # 128 -- slab lane width
assert LANES == 128

# ---- packed-parameter slab row offsets (sublane-aligned static blocks) ----
WHH0 = 0                                      # rows [ 0, 32) : Whh^T          (HID, 4H)
TABLE0 = WHH0 + HID                           # rows [32, 52) : emb@Wih^T + b  (VOCAB, 4H)
WTAG0 = ((TABLE0 + VOCAB + 7) // 8) * 8       # rows [56, 88) : Wtag^T (128-lane padded)
BTAG0 = WTAG0 + HID                           # row   88      : btag   (128-lane padded)
SLAB_ROWS = ((BTAG0 + 1 + 7) // 8) * 8        # 96


# ------------------------- Pallas kernel -------------------------
def lstm_crf_kernel(ids_ref,        # SMEM (SEQ,) int32        (scalar prefetch)
                    slab_ref,       # VMEM (SLAB_ROWS, 128) f32 packed params
                    out_ref):       # VMEM (SEQ, TAGS) f32
    H = HID

    # loop-invariant recurrent weight, cast once to bf16 (single MXU pass / step)
    whh_bf = slab_ref[WHH0:WHH0 + HID, :].astype(jnp.bfloat16)      # (HID, 4H)

    h = jnp.zeros((1, HID), jnp.float32)
    c = jnp.zeros((1, HID), jnp.float32)
    hs = []
    # statically-unrolled recurrence over SEQ time steps
    for t in range(SEQ):
        # fused embedding + input projection: one lane-dense 128-wide row read
        xw_t = slab_ref[pl.ds(TABLE0 + ids_ref[t], 1), :]           # (1, 4H) f32
        if t == 0:
            gates = xw_t                                            # h == 0
        else:
            gates = xw_t + jnp.dot(h.astype(jnp.bfloat16), whh_bf,
                                   preferred_element_type=jnp.float32)
        # sigmoid via tanh so each nonlinearity is exactly one EUP push
        sig = 0.5 * jnp.tanh(0.5 * gates) + 0.5                     # (1, 4H)
        tnh = jnp.tanh(gates)                                       # (1, 4H)
        i_g = sig[:, 0:H]
        f_g = sig[:, H:2 * H]
        g_g = tnh[:, 2 * H:3 * H]
        o_g = sig[:, 3 * H:4 * H]
        c = i_g * g_g if t == 0 else f_g * c + i_g * g_g
        h = o_g * jnp.tanh(c)
        hs.append(h)                                                # kept in registers

    hseq = jnp.concatenate(hs, axis=0)                              # (SEQ, HID)

    # hidden2tag (f32, one-time, off the recurrent chain) + log_softmax over tags
    wtag = slab_ref[WTAG0:WTAG0 + HID, :]                           # (HID, 128) padded
    btag = slab_ref[BTAG0:BTAG0 + 1, :]                             # (1, 128) padded
    tag_pad = jnp.dot(hseq, wtag, preferred_element_type=jnp.float32) + btag
    tag = tag_pad[:, 0:TAGS]                                        # (SEQ, TAGS)
    m = jnp.max(tag, axis=1, keepdims=True)
    shifted = tag - m
    lse = jnp.log(jnp.sum(jnp.exp(shifted), axis=1, keepdims=True))
    out_ref[...] = shifted - lse


# ------------------------- wrapper -------------------------
def lstm_crf_forward(sentence, emb, wih, whh, bih, bhh, wtag, btag):
    """sentence: (SEQ,) int ids; returns (SEQ, TAGS) float32 log-probs."""
    # clamp ids: no runtime OOB check exists for VMEM reads inside the kernel
    ids = jnp.clip(sentence.astype(jnp.int32), 0, VOCAB - 1)

    f32 = jnp.float32
    # fused embedding + input projection table (weights-only, folded under jit)
    table = emb.astype(f32) @ wih.T.astype(f32) + (bih + bhh).astype(f32)[None, :]
    whh_t = whh.T.astype(f32)                                       # (HID, 4H)
    wtag_pad = jnp.zeros((HID, LANES), f32).at[:, :TAGS].set(wtag.T.astype(f32))
    btag_pad = jnp.zeros((1, LANES), f32).at[0, :TAGS].set(btag.astype(f32))

    slab = jnp.concatenate(
        [whh_t,                                                     # rows  0..31
         table,                                                     # rows 32..51
         jnp.zeros((WTAG0 - (TABLE0 + VOCAB), LANES), f32),         # rows 52..55
         wtag_pad,                                                  # rows 56..87
         btag_pad,                                                  # row  88
         jnp.zeros((SLAB_ROWS - (BTAG0 + 1), LANES), f32)],         # rows 89..95
        axis=0)                                                     # (96, 128)

    grid_spec = pltpu.PrefetchScalarGridSpec(
        num_scalar_prefetch=1,
        grid=(1,),
        in_specs=[pl.BlockSpec((SLAB_ROWS, LANES), lambda i, ids: (0, 0))],
        out_specs=pl.BlockSpec((SEQ, TAGS), lambda i, ids: (0, 0)),
        scratch_shapes=[],
    )

    return pl.pallas_call(
        lstm_crf_kernel,
        grid_spec=grid_spec,
        out_shape=jax.ShapeDtypeStruct((SEQ, TAGS), jnp.float32),
        compiler_params=pltpu.CompilerParams(
            dimension_semantics=("arbitrary",)),
    )(ids, slab)


# ------------------------- pure-JAX reference -------------------------
def reference_forward(sentence, emb, wih, whh, bih, bhh, wtag, btag):
    x = emb[sentence]                                               # (SEQ, EMB)

    def step(carry, xt):
        h, c = carry
        gates = xt @ wih.T + bih + h @ whh.T + bhh
        i, f, g, o = jnp.split(gates, 4)
        i = jax.nn.sigmoid(i)
        f = jax.nn.sigmoid(f)
        g = jnp.tanh(g)
        o = jax.nn.sigmoid(o)
        c = f * c + i * g
        h = o * jnp.tanh(c)
        return (h, c), h

    (_, _), hs = lax.scan(step, (jnp.zeros(HID), jnp.zeros(HID)), x)
    tag_space = hs @ wtag.T + btag
    return jax.nn.log_softmax(tag_space, axis=1)


# ------------------------- main -------------------------
if __name__ == "__main__":
    key = jax.random.PRNGKey(0)
    k = jax.random.split(key, 9)

    # Deterministic parameter init (shapes match the PyTorch module).
    emb = jax.random.normal(k[0], (VOCAB, EMB), jnp.float32)
    s = 1.0 / np.sqrt(HID)
    wih = jax.random.uniform(k[1], (4 * HID, EMB), jnp.float32, -s, s)
    whh = jax.random.uniform(k[2], (4 * HID, HID), jnp.float32, -s, s)
    bih = jax.random.uniform(k[3], (4 * HID,), jnp.float32, -s, s)
    bhh = jax.random.uniform(k[4], (4 * HID,), jnp.float32, -s, s)
    wtag = jax.random.uniform(k[5], (TAGS, HID), jnp.float32, -s, s)
    btag = jax.random.uniform(k[6], (TAGS,), jnp.float32, -s, s)

    # CRF transition matrix exists as a parameter but is NOT used in forward().
    transitions = jax.random.normal(k[7], (TAGS, TAGS), jnp.float32)
    transitions = transitions.at[0, :].set(-10000.0)   # start_tag_ix = [0]
    transitions = transitions.at[:, 1].set(-10000.0)   # stop_tag_ix  = [1]
    # TODO(synk): transitions is unused by LSTM_CRF_.forward (no CRF decode in forward).

    sentence = jax.random.randint(k[8], (SEQ,), 0, VOCAB, jnp.int32)

    fwd = jax.jit(lstm_crf_forward)
    out = fwd(sentence, emb, wih, whh, bih, bhh, wtag, btag)
    out = jax.block_until_ready(out)

    ref = reference_forward(sentence, emb, wih, whh, bih, bhh, wtag, btag)
    ref = jax.block_until_ready(ref)

    # Tolerance relaxed vs. the pure-f32 version because the recurrent
    # h @ Whh^T matmul now uses bf16 operands (f32 accumulation).
    if not np.allclose(np.asarray(out), np.asarray(ref), atol=2e-2, rtol=2e-2):
        raise AssertionError("Pallas output does not match reference")

    print("KERNEL_OK")
</pallas_src>

<mosaic_0001>
module attributes {stable_mosaic.version = 11 : i64} {
  func.func @lstm_crf_kernel(%arg0: i32, %arg1: memref<8xi32, #tpu.memory_space<smem>>, %arg2: memref<96x128xf32, #tpu.memory_space<vmem>>, %arg3: memref<8x8xf32, #tpu.memory_space<vmem>>) attributes {dimension_semantics = [#tpu.dimension_semantics<arbitrary>], iteration_bounds = array<i64: 1>, scalar_prefetch = 1 : i64, scratch_operands = 0 : i64, tpu.core_type = #tpu.core_type<tc>, window_params = [{pipeline_mode = #tpu.pipeline_mode<synchronous>, transform_indices = @transform_0, window_bounds = array<i64: 96, 128>}, {pipeline_mode = #tpu.pipeline_mode<synchronous>, transform_indices = @transform_1, window_bounds = array<i64: 8, 8>}]} {
    %c0 = arith.constant 0 : index
    %c0_0 = arith.constant 0 : index
    %0 = vector.load %arg2[%c0, %c0_0] : memref<96x128xf32, #tpu.memory_space<vmem>>, vector<32x128xf32>
    %1 = arith.truncf %0 : vector<32x128xf32> to vector<32x128xbf16>
    %c0_1 = arith.constant 0 : index
    %2 = memref.load %arg1[%c0_1] : memref<8xi32, #tpu.memory_space<smem>>
    %c32_i32 = arith.constant 32 : i32
    %3 = arith.addi %c32_i32, %2 : i32
    %4 = arith.index_cast %3 : i32 to index
    %c0_2 = arith.constant 0 : index
    %5 = vector.load %arg2[%4, %c0_2] : memref<96x128xf32, #tpu.memory_space<vmem>>, vector<1x128xf32>
    %cst = arith.constant 5.000000e-01 : f32
    %6 = vector.broadcast %cst : f32 to vector<1x128xf32>
    %7 = arith.mulf %6, %5 : vector<1x128xf32>
    %8 = math.tanh %7 : vector<1x128xf32>
    %cst_3 = arith.constant 5.000000e-01 : f32
    %9 = vector.broadcast %cst_3 : f32 to vector<1x128xf32>
    %10 = arith.mulf %9, %8 : vector<1x128xf32>
    %cst_4 = arith.constant 5.000000e-01 : f32
    %11 = vector.broadcast %cst_4 : f32 to vector<1x128xf32>
    %12 = arith.addf %10, %11 : vector<1x128xf32>
    %13 = math.tanh %5 : vector<1x128xf32>
    %14 = vector.extract_strided_slice %12 {offsets = [0, 0], sizes = [1, 32], strides = [1, 1]} : vector<1x128xf32> to vector<1x32xf32>
    %15 = vector.extract_strided_slice %13 {offsets = [0, 64], sizes = [1, 32], strides = [1, 1]} : vector<1x128xf32> to vector<1x32xf32>
    %16 = vector.extract_strided_slice %12 {offsets = [0, 96], sizes = [1, 32], strides = [1, 1]} : vector<1x128xf32> to vector<1x32xf32>
    %17 = arith.mulf %14, %15 : vector<1x32xf32>
    %18 = math.tanh %17 : vector<1x32xf32>
    %19 = arith.mulf %16, %18 : vector<1x32xf32>
    %c1 = arith.constant 1 : index
    %20 = memref.load %arg1[%c1] : memref<8xi32, #tpu.memory_space<smem>>
    %c32_i32_5 = arith.constant 32 : i32
    %21 = arith.addi %c32_i32_5, %20 : i32
    %22 = arith.index_cast %21 : i32 to index
    %c0_6 = arith.constant 0 : index
    %23 = vector.load %arg2[%22, %c0_6] : memref<96x128xf32, #tpu.memory_space<vmem>>, vector<1x128xf32>
    %24 = arith.truncf %19 : vector<1x32xf32> to vector<1x32xbf16>
    %cst_7 = arith.constant dense<0.000000e+00> : vector<1x128xf32>
    %25 = tpu.matmul %24, %1, %cst_7 {dimension_numbers = #tpu.dot_dimension_numbers<[1], [0], [0], [1], [0, 0, 1, 1], [], []>} : vector<1x32xbf16>, vector<32x128xbf16>, vector<1x128xf32> -> vector<1x128xf32>
    %26 = arith.addf %23, %25 : vector<1x128xf32>
    %cst_8 = arith.constant 5.000000e-01 : f32
    %27 = vector.broadcast %cst_8 : f32 to vector<1x128xf32>
    %28 = arith.mulf %27, %26 : vector<1x128xf32>
    %29 = math.tanh %28 : vector<1x128xf32>
    %cst_9 = arith.constant 5.000000e-01 : f32
    %30 = vector.broadcast %cst_9 : f32 to vector<1x128xf32>
    %31 = arith.mulf %30, %29 : vector<1x128xf32>
    %cst_10 = arith.constant 5.000000e-01 : f32
    %32 = vector.broadcast %cst_10 : f32 to vector<1x128xf32>
    %33 = arith.addf %31, %32 : vector<1x128xf32>
    %34 = math.tanh %26 : vector<1x128xf32>
    %35 = vector.extract_strided_slice %33 {offsets = [0, 0], sizes = [1, 32], strides = [1, 1]} : vector<1x128xf32> to vector<1x32xf32>
    %36 = vector.extract_strided_slice %33 {offsets = [0, 32], sizes = [1, 32], strides = [1, 1]} : vector<1x128xf32> to vector<1x32xf32>
    %37 = vector.extract_strided_slice %34 {offsets = [0, 64], sizes = [1, 32], strides = [1, 1]} : vector<1x128xf32> to vector<1x32xf32>
    %38 = vector.extract_strided_slice %33 {offsets = [0, 96], sizes = [1, 32], strides = [1, 1]} : vector<1x128xf32> to vector<1x32xf32>
    %39 = arith.mulf %36, %17 : vector<1x32xf32>
    %40 = arith.mulf %35, %37 : vector<1x32xf32>
    %41 = arith.addf %39, %40 : vector<1x32xf32>
    %42 = math.tanh %41 : vector<1x32xf32>
    %43 = arith.mulf %38, %42 : vector<1x32xf32>
    %c2 = arith.constant 2 : index
    %44 = memref.load %arg1[%c2] : memref<8xi32, #tpu.memory_space<smem>>
    %c32_i32_11 = arith.constant 32 : i32
    %45 = arith.addi %c32_i32_11, %44 : i32
    %46 = arith.index_cast %45 : i32 to index
    %c0_12 = arith.constant 0 : index
    %47 = vector.load %arg2[%46, %c0_12] : memref<96x128xf32, #tpu.memory_space<vmem>>, vector<1x128xf32>
    %48 = arith.truncf %43 : vector<1x32xf32> to vector<1x32xbf16>
    %cst_13 = arith.constant dense<0.000000e+00> : vector<1x128xf32>
    %49 = tpu.matmul %48, %1, %cst_13 {dimension_numbers = #tpu.dot_dimension_numbers<[1], [0], [0], [1], [0, 0, 1, 1], [], []>} : vector<1x32xbf16>, vector<32x128xbf16>, vector<1x128xf32> -> vector<1x128xf32>
    %50 = arith.addf %47, %49 : vector<1x128xf32>
    %cst_14 = arith.constant 5.000000e-01 : f32
    %51 = vector.broadcast %cst_14 : f32 to vector<1x128xf32>
    %52 = arith.mulf %51, %50 : vector<1x128xf32>
    %53 = math.tanh %52 : vector<1x128xf32>
    %cst_15 = arith.constant 5.000000e-01 : f32
    %54 = vector.broadcast %cst_15 : f32 to vector<1x128xf32>
    %55 = arith.mulf %54, %53 : vector<1x128xf32>
    %cst_16 = arith.constant 5.000000e-01 : f32
    %56 = vector.broadcast %cst_16 : f32 to vector<1x128xf32>
    %57 = arith.addf %55, %56 : vector<1x128xf32>
    %58 = math.tanh %50 : vector<1x128xf32>
    %59 = vector.extract_strided_slice %57 {offsets = [0, 0], sizes = [1, 32], strides = [1, 1]} : vector<1x128xf32> to vector<1x32xf32>
    %60 = vector.extract_strided_slice %57 {offsets = [0, 32], sizes = [1, 32], strides = [1, 1]} : vector<1x128xf32> to vector<1x32xf32>
    %61 = vector.extract_strided_slice %58 {offsets = [0, 64], sizes = [1, 32], strides = [1, 1]} : vector<1x128xf32> to vector<1x32xf32>
    %62 = vector.extract_strided_slice %57 {offsets = [0, 96], sizes = [1, 32], strides = [1, 1]} : vector<1x128xf32> to vector<1x32xf32>
    %63 = arith.mulf %60, %41 : vector<1x32xf32>
    %64 = arith.mulf %59, %61 : vector<1x32xf32>
    %65 = arith.addf %63, %64 : vector<1x32xf32>
    %66 = math.tanh %65 : vector<1x32xf32>
    %67 = arith.mulf %62, %66 : vector<1x32xf32>
    %c3 = arith.constant 3 : index
    %68 = memref.load %arg1[%c3] : memref<8xi32, #tpu.memory_space<smem>>
    %c32_i32_17 = arith.constant 32 : i32
    %69 = arith.addi %c32_i32_17, %68 : i32
    %70 = arith.index_cast %69 : i32 to index
    %c0_18 = arith.constant 0 : index
    %71 = vector.load %arg2[%70, %c0_18] : memref<96x128xf32, #tpu.memory_space<vmem>>, vector<1x128xf32>
    %72 = arith.truncf %67 : vector<1x32xf32> to vector<1x32xbf16>
    %cst_19 = arith.constant dense<0.000000e+00> : vector<1x128xf32>
    %73 = tpu.matmul %72, %1, %cst_19 {dimension_numbers = #tpu.dot_dimension_numbers<[1], [0], [0], [1], [0, 0, 1, 1], [], []>} : vector<1x32xbf16>, vector<32x128xbf16>, vector<1x128xf32> -> vector<1x128xf32>
    %74 = arith.addf %71, %73 : vector<1x128xf32>
    %cst_20 = arith.constant 5.000000e-01 : f32
    %75 = vector.broadcast %cst_20 : f32 to vector<1x128xf32>
    %76 = arith.mulf %75, %74 : vector<1x128xf32>
    %77 = math.tanh %76 : vector<1x128xf32>
    %cst_21 = arith.constant 5.000000e-01 : f32
    %78 = vector.broadcast %cst_21 : f32 to vector<1x128xf32>
    %79 = arith.mulf %78, %77 : vector<1x128xf32>
    %cst_22 = arith.constant 5.000000e-01 : f32
    %80 = vector.broadcast %cst_22 : f32 to vector<1x128xf32>
    %81 = arith.addf %79, %80 : vector<1x128xf32>
    %82 = math.tanh %74 : vector<1x128xf32>
    %83 = vector.extract_strided_slice %81 {offsets = [0, 0], sizes = [1, 32], strides = [1, 1]} : vector<1x128xf32> to vector<1x32xf32>
    %84 = vector.extract_strided_slice %81 {offsets = [0, 32], sizes = [1, 32], strides = [1, 1]} : vector<1x128xf32> to vector<1x32xf32>
    %85 = vector.extract_strided_slice %82 {offsets = [0, 64], sizes = [1, 32], strides = [1, 1]} : vector<1x128xf32> to vector<1x32xf32>
    %86 = vector.extract_strided_slice %81 {offsets = [0, 96], sizes = [1, 32], strides = [1, 1]} : vector<1x128xf32> to vector<1x32xf32>
    %87 = arith.mulf %84, %65 : vector<1x32xf32>
    %88 = arith.mulf %83, %85 : vector<1x32xf32>
    %89 = arith.addf %87, %88 : vector<1x32xf32>
    %90 = math.tanh %89 : vector<1x32xf32>
    %91 = arith.mulf %86, %90 : vector<1x32xf32>
    %c4 = arith.constant 4 : index
    %92 = memref.load %arg1[%c4] : memref<8xi32, #tpu.memory_space<smem>>
    %c32_i32_23 = arith.constant 32 : i32
    %93 = arith.addi %c32_i32_23, %92 : i32
    %94 = arith.index_cast %93 : i32 to index
    %c0_24 = arith.constant 0 : index
    %95 = vector.load %arg2[%94, %c0_24] : memref<96x128xf32, #tpu.memory_space<vmem>>, vector<1x128xf32>
    %96 = arith.truncf %91 : vector<1x32xf32> to vector<1x32xbf16>
    %cst_25 = arith.constant dense<0.000000e+00> : vector<1x128xf32>
    %97 = tpu.matmul %96, %1, %cst_25 {dimension_numbers = #tpu.dot_dimension_numbers<[1], [0], [0], [1], [0, 0, 1, 1], [], []>} : vector<1x32xbf16>, vector<32x128xbf16>, vector<1x128xf32> -> vector<1x128xf32>
    %98 = arith.addf %95, %97 : vector<1x128xf32>
    %cst_26 = arith.constant 5.000000e-01 : f32
    %99 = vector.broadcast %cst_26 : f32 to vector<1x128xf32>
    %100 = arith.mulf %99, %98 : vector<1x128xf32>
    %101 = math.tanh %100 : vector<1x128xf32>
    %cst_27 = arith.constant 5.000000e-01 : f32
    %102 = vector.broadcast %cst_27 : f32 to vector<1x128xf32>
    %103 = arith.mulf %102, %101 : vector<1x128xf32>
    %cst_28 = arith.constant 5.000000e-01 : f32
    %104 = vector.broadcast %cst_28 : f32 to vector<1x128xf32>
    %105 = arith.addf %103, %104 : vector<1x128xf32>
    %106 = math.tanh %98 : vector<1x128xf32>
    %107 = vector.extract_strided_slice %105 {offsets = [0, 0], sizes = [1, 32], strides = [1, 1]} : vector<1x128xf32> to vector<1x32xf32>
    %108 = vector.extract_strided_slice %105 {offsets = [0, 32], sizes = [1, 32], strides = [1, 1]} : vector<1x128xf32> to vector<1x32xf32>
    %109 = vector.extract_strided_slice %106 {offsets = [0, 64], sizes = [1, 32], strides = [1, 1]} : vector<1x128xf32> to vector<1x32xf32>
    %110 = vector.extract_strided_slice %105 {offsets = [0, 96], sizes = [1, 32], strides = [1, 1]} : vector<1x128xf32> to vector<1x32xf32>
    %111 = arith.mulf %108, %89 : vector<1x32xf32>
    %112 = arith.mulf %107, %109 : vector<1x32xf32>
    %113 = arith.addf %111, %112 : vector<1x32xf32>
    %114 = math.tanh %113 : vector<1x32xf32>
    %115 = arith.mulf %110, %114 : vector<1x32xf32>
    %c5 = arith.constant 5 : index
    %116 = memref.load %arg1[%c5] : memref<8xi32, #tpu.memory_space<smem>>
    %c32_i32_29 = arith.constant 32 : i32
    %117 = arith.addi %c32_i32_29, %116 : i32
    %118 = arith.index_cast %117 : i32 to index
    %c0_30 = arith.constant 0 : index
    %119 = vector.load %arg2[%118, %c0_30] : memref<96x128xf32, #tpu.memory_space<vmem>>, vector<1x128xf32>
    %120 = arith.truncf %115 : vector<1x32xf32> to vector<1x32xbf16>
    %cst_31 = arith.constant dense<0.000000e+00> : vector<1x128xf32>
    %121 = tpu.matmul %120, %1, %cst_31 {dimension_numbers = #tpu.dot_dimension_numbers<[1], [0], [0], [1], [0, 0, 1, 1], [], []>} : vector<1x32xbf16>, vector<32x128xbf16>, vector<1x128xf32> -> vector<1x128xf32>
    %122 = arith.addf %119, %121 : vector<1x128xf32>
    %cst_32 = arith.constant 5.000000e-01 : f32
    %123 = vector.broadcast %cst_32 : f32 to vector<1x128xf32>
    %124 = arith.mulf %123, %122 : vector<1x128xf32>
    %125 = math.tanh %124 : vector<1x128xf32>
    %cst_33 = arith.constant 5.000000e-01 : f32
    %126 = vector.broadcast %cst_33 : f32 to vector<1x128xf32>
    %127 = arith.mulf %126, %125 : vector<1x128xf32>
    %cst_34 = arith.constant 5.000000e-01 : f32
    %128 = vector.broadcast %cst_34 : f32 to vector<1x128xf32>
    %129 = arith.addf %127, %128 : vector<1x128xf32>
    %130 = math.tanh %122 : vector<1x128xf32>
    %131 = vector.extract_strided_slice %129 {offsets = [0, 0], sizes = [1, 32], strides = [1, 1]} : vector<1x128xf32> to vector<1x32xf32>
    %132 = vector.extract_strided_slice %129 {offsets = [0, 32], sizes = [1, 32], strides = [1, 1]} : vector<1x128xf32> to vector<1x32xf32>
    %133 = vector.extract_strided_slice %130 {offsets = [0, 64], sizes = [1, 32], strides = [1, 1]} : vector<1x128xf32> to vector<1x32xf32>
    %134 = vector.extract_strided_slice %129 {offsets = [0, 96], sizes = [1, 32], strides = [1, 1]} : vector<1x128xf32> to vector<1x32xf32>
    %135 = arith.mulf %132, %113 : vector<1x32xf32>
    %136 = arith.mulf %131, %133 : vector<1x32xf32>
    %137 = arith.addf %135, %136 : vector<1x32xf32>
    %138 = math.tanh %137 : vector<1x32xf32>
    %139 = arith.mulf %134, %138 : vector<1x32xf32>
    %c6 = arith.constant 6 : index
    %140 = memref.load %arg1[%c6] : memref<8xi32, #tpu.memory_space<smem>>
    %c32_i32_35 = arith.constant 32 : i32
    %141 = arith.addi %c32_i32_35, %140 : i32
    %142 = arith.index_cast %141 : i32 to index
    %c0_36 = arith.constant 0 : index
    %143 = vector.load %arg2[%142, %c0_36] : memref<96x128xf32, #tpu.memory_space<vmem>>, vector<1x128xf32>
    %144 = arith.truncf %139 : vector<1x32xf32> to vector<1x32xbf16>
    %cst_37 = arith.constant dense<0.000000e+00> : vector<1x128xf32>
    %145 = tpu.matmul %144, %1, %cst_37 {dimension_numbers = #tpu.dot_dimension_numbers<[1], [0], [0], [1], [0, 0, 1, 1], [], []>} : vector<1x32xbf16>, vector<32x128xbf16>, vector<1x128xf32> -> vector<1x128xf32>
    %146 = arith.addf %143, %145 : vector<1x128xf32>
    %cst_38 = arith.constant 5.000000e-01 : f32
    %147 = vector.broadcast %cst_38 : f32 to vector<1x128xf32>
    %148 = arith.mulf %147, %146 : vector<1x128xf32>
    %149 = math.tanh %148 : vector<1x128xf32>
    %cst_39 = arith.constant 5.000000e-01 : f32
    %150 = vector.broadcast %cst_39 : f32 to vector<1x128xf32>
    %151 = arith.mulf %150, %149 : vector<1x128xf32>
    %cst_40 = arith.constant 5.000000e-01 : f32
    %152 = vector.broadcast %cst_40 : f32 to vector<1x128xf32>
    %153 = arith.addf %151, %152 : vector<1x128xf32>
    %154 = math.tanh %146 : vector<1x128xf32>
    %155 = vector.extract_strided_slice %153 {offsets = [0, 0], sizes = [1, 32], strides = [1, 1]} : vector<1x128xf32> to vector<1x32xf32>
    %156 = vector.extract_strided_slice %153 {offsets = [0, 32], sizes = [1, 32], strides = [1, 1]} : vector<1x128xf32> to vector<1x32xf32>
    %157 = vector.extract_strided_slice %154 {offsets = [0, 64], sizes = [1, 32], strides = [1, 1]} : vector<1x128xf32> to vector<1x32xf32>
    %158 = vector.extract_strided_slice %153 {offsets = [0, 96], sizes = [1, 32], strides = [1, 1]} : vector<1x128xf32> to vector<1x32xf32>
    %159 = arith.mulf %156, %137 : vector<1x32xf32>
    %160 = arith.mulf %155, %157 : vector<1x32xf32>
    %161 = arith.addf %159, %160 : vector<1x32xf32>
    %162 = math.tanh %161 : vector<1x32xf32>
    %163 = arith.mulf %158, %162 : vector<1x32xf32>
    %c7 = arith.constant 7 : index
    %164 = memref.load %arg1[%c7] : memref<8xi32, #tpu.memory_space<smem>>
    %c32_i32_41 = arith.constant 32 : i32
    %165 = arith.addi %c32_i32_41, %164 : i32
    %166 = arith.index_cast %165 : i32 to index
    %c0_42 = arith.constant 0 : index
    %167 = vector.load %arg2[%166, %c0_42] : memref<96x128xf32, #tpu.memory_space<vmem>>, vector<1x128xf32>
    %168 = arith.truncf %163 : vector<1x32xf32> to vector<1x32xbf16>
    %cst_43 = arith.constant dense<0.000000e+00> : vector<1x128xf32>
    %169 = tpu.matmul %168, %1, %cst_43 {dimension_numbers = #tpu.dot_dimension_numbers<[1], [0], [0], [1], [0, 0, 1, 1], [], []>} : vector<1x32xbf16>, vector<32x128xbf16>, vector<1x128xf32> -> vector<1x128xf32>
    %170 = arith.addf %167, %169 : vector<1x128xf32>
    %cst_44 = arith.constant 5.000000e-01 : f32
    %171 = vector.broadcast %cst_44 : f32 to vector<1x128xf32>
    %172 = arith.mulf %171, %170 : vector<1x128xf32>
    %173 = math.tanh %172 : vector<1x128xf32>
    %cst_45 = arith.constant 5.000000e-01 : f32
    %174 = vector.broadcast %cst_45 : f32 to vector<1x128xf32>
    %175 = arith.mulf %174, %173 : vector<1x128xf32>
    %cst_46 = arith.constant 5.000000e-01 : f32
    %176 = vector.broadcast %cst_46 : f32 to vector<1x128xf32>
    %177 = arith.addf %175, %176 : vector<1x128xf32>
    %178 = math.tanh %170 : vector<1x128xf32>
    %179 = vector.extract_strided_slice %177 {offsets = [0, 0], sizes = [1, 32], strides = [1, 1]} : vector<1x128xf32> to vector<1x32xf32>
    %180 = vector.extract_strided_slice %177 {offsets = [0, 32], sizes = [1, 32], strides = [1, 1]} : vector<1x128xf32> to vector<1x32xf32>
    %181 = vector.extract_strided_slice %178 {offsets = [0, 64], sizes = [1, 32], strides = [1, 1]} : vector<1x128xf32> to vector<1x32xf32>
    %182 = vector.extract_strided_slice %177 {offsets = [0, 96], sizes = [1, 32], strides = [1, 1]} : vector<1x128xf32> to vector<1x32xf32>
    %183 = arith.mulf %180, %161 : vector<1x32xf32>
    %184 = arith.mulf %179, %181 : vector<1x32xf32>
    %185 = arith.addf %183, %184 : vector<1x32xf32>
    %186 = math.tanh %185 : vector<1x32xf32>
    %187 = arith.mulf %182, %186 : vector<1x32xf32>
    %188 = tpu.concatenate %19, %43, %67, %91, %115, %139, %163, %187 in 0 : vector<1x32xf32>, vector<1x32xf32>, vector<1x32xf32>, vector<1x32xf32>, vector<1x32xf32>, vector<1x32xf32>, vector<1x32xf32>, vector<1x32xf32> -> vector<8x32xf32>
    %c56 = arith.constant 56 : index
    %c0_47 = arith.constant 0 : index
    %189 = vector.load %arg2[%c56, %c0_47] : memref<96x128xf32, #tpu.memory_space<vmem>>, vector<32x128xf32>
    %c88 = arith.constant 88 : index
    %c0_48 = arith.constant 0 : index
    %190 = vector.load %arg2[%c88, %c0_48] : memref<96x128xf32, #tpu.memory_space<vmem>>, vector<1x128xf32>
    %cst_49 = arith.constant dense<0.000000e+00> : vector<8x128xf32>
    %191 = tpu.matmul %188, %189, %cst_49 {dimension_numbers = #tpu.dot_dimension_numbers<[1], [0], [0], [1], [0, 0, 1, 1], [], []>} : vector<8x32xf32>, vector<32x128xf32>, vector<8x128xf32> -> vector<8x128xf32>
    %192 = vector.broadcast %190 : vector<1x128xf32> to vector<8x128xf32>
    %193 = arith.addf %191, %192 : vector<8x128xf32>
    %194 = vector.extract_strided_slice %193 {offsets = [0, 0], sizes = [8, 8], strides = [1, 1]} : vector<8x128xf32> to vector<8x8xf32>
    %cst_50 = arith.constant dense<0xFF800000> : vector<8xf32>
    %195 = vector.multi_reduction <maximumf>, %194, %cst_50 [1] : vector<8x8xf32> to vector<8xf32>
    %196 = vector.shape_cast %195 : vector<8xf32> to vector<8x1xf32>
    %197 = vector.broadcast %196 : vector<8x1xf32> to vector<8x8xf32>
    %198 = arith.subf %194, %197 : vector<8x8xf32>
    %199 = math.exp %198 : vector<8x8xf32>
    %cst_51 = arith.constant dense<0.000000e+00> : vector<8xf32>
    %200 = vector.multi_reduction <add>, %199, %cst_51 [1] : vector<8x8xf32> to vector<8xf32>
    %201 = vector.shape_cast %200 : vector<8xf32> to vector<8x1xf32>
    %202 = math.log %201 : vector<8x1xf32>
    %203 = vector.broadcast %202 : vector<8x1xf32> to vector<8x8xf32>
    %204 = arith.subf %198, %203 : vector<8x8xf32>
    %c0_52 = arith.constant 0 : index
    %c0_53 = arith.constant 0 : index
    %205 = vector.load %arg3[%c0_52, %c0_53] : memref<8x8xf32, #tpu.memory_space<vmem>>, vector<8x8xf32>
    tpu.vector_store %arg3[%c0_52, %c0_53], %204 {strides = array<i32>} : memref<8x8xf32, #tpu.memory_space<vmem>>, vector<8x8xf32>,
    return
  }
  func.func @transform_0(%arg0: i32, %arg1: memref<8xi32, #tpu.memory_space<smem>>) -> (i32, i32) {
    %c0_i32 = arith.constant 0 : i32
    %c0_i32_0 = arith.constant 0 : i32
    %c0_i32_1 = arith.constant 0 : i32
    return %c0_i32, %c0_i32_0 : i32, i32
  }
  func.func @transform_1(%arg0: i32, %arg1: memref<8xi32, #tpu.memory_space<smem>>) -> (i32, i32) {
    %c0_i32 = arith.constant 0 : i32
    %c0_i32_0 = arith.constant 0 : i32
    %c0_i32_1 = arith.constant 0 : i32
    return %c0_i32, %c0_i32_0 : i32, i32
  }
}

</mosaic_0001>

<bundles_post_ra>
// kernel: lstm_crf_forward.1
= control target key start
LH: loop header
LB: loop body
LE: loop exit
PB: predicated region body
PF: predicated region fallthrough
CT: control target
= control target key end

     0   :  { %s1134_s0 = inlined_call_operand.vmem [shape: s32[8], index: 0, kind: input, shape index: {}]   ;;  %s1135_s1 = inlined_call_operand.vmem [shape: f32[96,128], index: 1, kind: input, shape index: {}]   ;;  %s1136_s2 = inlined_call_operand.hbm [shape: f32[8,8], index: 2, kind: output, shape index: {}]  }
   0x1   :  { %s7_s11 = sshll.u32 %s1134_s0, 4  ;;  %s8_s11 = int_to_ptr.vmem [resolvable:$true] %s7_s11 }
   0x2   :  { %s912_s12 = scalar_lea.vmem %s8_s11, 16  ;;  %p917_p1 = scmp.lt.s32.totalorder %s8_s11, %s8_s11 }
   0x3   :  { %p913_p0 = scmp.ne.s32.totalorder %s8_s11, %s912_s12  ;;  %p918_p2 = scmp.lt.s32.totalorder %s912_s12, %s912_s12 }
   0x5   :  { %p919_p3 = por %p918_p2, %p917_p1 }
   0x7   :  { %p920_p4 = pnand %p919_p3, %p913_p0 }
   0x9   :  { %923 = shalt.err (!%p920_p4)  }
   0xa   :  { %s950_s13 = smov [#allocation3]  }
   0xb   :  { %10 = dma.vmem_to_smem %s8_s11, 16, %s950_s13, [#allocation2] }
   0xc   :  { %946 = dma.done.wait [#allocation2], 16 }
   0xd   :  { %947 = vsyncadd [#allocation2], 4294967280 }
   0xe   :  { %12 = sfence }
   0xf   :  { %s23_s14 = sld [smem:[#allocation3]] }
  0x10   :  { %13 = vsyncpa [#allocation5], 0  ;;  %s951_s0 = smov 64   ;;  %v17_v8 = vld [vmem:[%s1135_s1] sm:$0xff]  ;;  %v18_v9 = vld [vmem:[%s1135_s1 + $0x8] sm:$0xff]  ;;  %v952_v11 = vmov 0.0  }
  0x11   :  { %v19_v10 = vld [vmem:[%s1135_s1 + $0x10] sm:$0xff]  ;;  %779 = vmatprep.subr.bf16.mxu0 %v952_v11  ;;  %v990_v12 = vpack.c.bf16 %v18_v9, %v17_v8  ;;  %v20_v13 = vld [vmem:[%s1135_s1 + $0x18] sm:$0xff]  ;;  %vm953_vm0 = vmmov 0   ;;  %787 = vmatprep.subr.bf16.mxu1 %v952_v11  ;;  %s954_s26 = smov 96   ;;  %s955_s27 = smov 32   ;;  %vm51_vm1 = vcmask 261120  }
  0x12   :  { %783 = vmatprep.mubr.msk.bf16.mxu0 %vm953_vm0, %v952_v11  ;;  %791 = vmatprep.mubr.msk.bf16.mxu1 %vm953_vm0, %v952_v11  ;;  %v1001_v14 = vpack.c.bf16 %v20_v13, %v19_v10  ;;  %s730_s28 = sld [smem:[#allocation3 + $0x1]]  ;;  %s733_s4 = sld [smem:[#allocation3 + $0x2]]  ;;  %vm587_vm2 = vcmask 1040384   ;;  %vm589_vm3 = vcmask 1041408   ;;  %vm591_vm4 = vcmask 1042432  }
  0x13   :  { %780 = vmatpush3.bf16.msra.mxu0 %v990_v12  ;;  %788 = vmatpush3.bf16.msra.mxu1 %v990_v12  ;;  %s736_s8 = sld [smem:[#allocation3 + $0x3]]  ;;  %s739_s12 = sld [smem:[#allocation3 + $0x4]]  ;;  %vm593_vm5 = vcmask 1043456   ;;  %vm595_vm6 = vcmask 1044480   ;;  %vm597_vm7 = vcmask 1045504   ;;  %vm599_vm8 = vcmask 1046528  }
  0x14   :  { %781 = vmatprep.subr.bf16.mxu0 %v952_v11  ;;  %789 = vmatprep.subr.bf16.mxu1 %v952_v11  ;;  %s742_s16 = sld [smem:[#allocation3 + $0x5]]  ;;  %s745_s20 = sld [smem:[#allocation3 + $0x6]]  ;;  %vm685_vm9 = vcmask 64512  }
  0x15   :  { %s713_s17 = scalar_lea.vmem %s1135_s1, %s23_s14  ;;  %s748_s24 = sld [smem:[#allocation3 + $0x7]] }
  0x16   :  { %v729_v0 = vld [vmem:[%s713_s17 + $0x20] sm:$0x1] }
  0x17   :  { %860 = vtanh.f32 %v729_v0  ;;  %v27_v2 = vmul.f32 0.5, %v729_v0  ;;  %782 = vmatpush3.bf16.msra.mxu0 %v1001_v14  ;;  %790 = vmatpush3.bf16.msra.mxu1 %v1001_v14 }
  0x18   :  { %795 = vmatprep.subr.bf16.mxu0 %v952_v11  ;;  %803 = vmatprep.subr.bf16.mxu1 %v952_v11  ;;  %s715_s3 = scalar_lea.vmem %s1135_s1, %s730_s28  ;;  %s717_s7 = scalar_lea.vmem %s1135_s1, %s733_s4 }
  0x19   :  { %862 = vtanh.f32 %v27_v2  ;;  %v731_v20 = vld [vmem:[%s715_s3 + $0x20] sm:$0x1]  ;;  %s719_s11 = scalar_lea.vmem %s1135_s1, %s736_s8  ;;  %s721_s15 = scalar_lea.vmem %s1135_s1, %s739_s12 }
  0x1a   :  { %v734_v42 = vld [vmem:[%s717_s7 + $0x20] sm:$0x1]  ;;  %s723_s19 = scalar_lea.vmem %s1135_s1, %s742_s16  ;;  %s725_s23 = scalar_lea.vmem %s1135_s1, %s745_s20 }
  0x1b   :  { %s727_s28 = scalar_lea.vmem %s1135_s1, %s748_s24 }
  0x21   :  { %v861_v1 = vpop.eup %860 }
  0x22   :  { %33 = vrot.lane.b32.xlu0 %v861_v1, %s951_s0 }
  0x23   :  { %v863_v3 = vpop.eup %862 }
  0x24   :  { %v29_v4 = vmul.f32 0.5, %v863_v3  ;;  %v737_v3 = vld [vmem:[%s719_s11 + $0x20] sm:$0x1] }
  0x26   :  { %v30_v5 = vadd.f32 0.5, %v29_v4 }
  0x94   :  { %v34_v6 = vpop.permute.xlu0 %33 }
  0x95   :  { %v36_v7 = vmul.f32 %v34_v6, %v30_v5 }
  0x97   :  { %864 = vtanh.f32 %v36_v7 }
  0xa1   :  { %v865_v15 = vpop.eup %864 }
  0xa2   :  { %39 = vrot.lane.b32.xlu0 %v865_v15, %s954_s26 }
  0xa6   :  { %102 = vrot.lane.b32.xlu0 %v36_v7, %s955_s27 }
 0x114   :  { %v40_v16 = vpop.permute.xlu0 %39 }
 0x115   :  { %v1011_v17 = vmul.f32 %v40_v16, %v30_v5 }
 0x117   :  { %v47_v18 = vpack.c.bf16 %v1011_v17, %v1011_v17 }
 0x118   :  { %v103_v33 = vpop.permute.xlu0 %102 }
 0x119   :  { %49 = vrot.lane.b32.xlu1 %v47_v18, %s955_s27 }
 0x18b   :  { %v50_v19 = vpop.permute.xlu1 %49 }
 0x18c   :  { %784 = vmatmul.mubr.msk.bf16.vlgmr.msra.gmra.mrb[0].mxu0 %vm51_vm1, %v50_v19 }
 0x18d   :  { %796 = vmatpush3.bf16.msra.mxu0 %v990_v12  ;;  %799 = vmatprep.mubr.msk.bf16.mxu0 %vm953_vm0, %v952_v11 }
 0x18e   :  { %797 = vmatprep.subr.bf16.mxu0 %v952_v11 }
 0x191   :  { %798 = vmatpush3.bf16.msra.mxu0 %v1001_v14 }
 0x192   :  { %811 = vmatprep.subr.bf16.mxu0 %v952_v11 }
 0x25f   :  { %v89_v21 = vpop.f32.mrb[0].mxu0 }
 0x260   :  { %v95_v22 = vadd.f32 %v731_v20, %v89_v21  ;;  %v785_v23 = vpop.f32.mrb[1].mxu0 }
 0x261   :  { %v92_v24 = vpop.f32.mrb[2].mxu0 }
 0x262   :  { %866 = vtanh.f32 %v95_v22  ;;  %v786_v25 = vpop.f32.mrb[3].mxu0  ;;  %v96_v27 = vmul.f32 0.5, %v95_v22 }
 0x264   :  { %868 = vtanh.f32 %v96_v27 }
 0x26c   :  { %v867_v26 = vpop.eup %866 }
 0x26d   :  { %107 = vrot.lane.b32.xlu1 %v867_v26, %s951_s0 }
 0x26e   :  { %v869_v28 = vpop.eup %868 }
 0x26f   :  { %v98_v29 = vmul.f32 0.5, %v869_v28 }
 0x271   :  { %v99_v30 = vadd.f32 0.5, %v98_v29  ;;  %v740_v29 = vld [vmem:[%s721_s15 + $0x20] sm:$0x1] }
 0x273   :  { %v105_v34 = vmul.f32 %v103_v33, %v99_v30 }
 0x2df   :  { %v108_v31 = vpop.permute.xlu1 %107 }
 0x2e0   :  { %v110_v32 = vmul.f32 %v108_v31, %v99_v30 }
 0x2e2   :  { %112 = vrot.lane.b32.xlu1 %v110_v32, %s955_s27 }
 0x354   :  { %v113_v35 = vpop.permute.xlu1 %112 }
 0x355   :  { %v115_v36 = vadd.f32 %v113_v35, %v105_v34 }
 0x357   :  { %870 = vtanh.f32 %v115_v36 }
 0x361   :  { %v871_v37 = vpop.eup %870 }
 0x362   :  { %118 = vrot.lane.b32.xlu0 %v871_v37, %s951_s0 }
 0x3d4   :  { %v119_v38 = vpop.permute.xlu0 %118 }
 0x3d5   :  { %v121_v39 = vmul.f32 %v119_v38, %v99_v30 }
 0x3d7   :  { %v126_v40 = vpack.c.bf16 %v121_v39, %v121_v39  ;;  %v567_v59 = vrot.slane %v121_v39, 7 }
 0x3d9   :  { %128 = vrot.lane.b32.xlu1 %v126_v40, %s955_s27  ;;  %v588_v0 = vsel %vm587_vm2, %v1011_v17, %v567_v59 }
 0x44b   :  { %v129_v41 = vpop.permute.xlu1 %128 }
 0x44c   :  { %792 = vmatmul.mubr.msk.bf16.vlgmr.msra.gmra.mrb[0].mxu1 %vm51_vm1, %v129_v41 }
 0x44d   :  { %804 = vmatpush3.bf16.msra.mxu1 %v990_v12  ;;  %807 = vmatprep.mubr.msk.bf16.mxu1 %vm953_vm0, %v952_v11 }
 0x44e   :  { %805 = vmatprep.subr.bf16.mxu1 %v952_v11 }
 0x451   :  { %806 = vmatpush3.bf16.msra.mxu1 %v1001_v14 }
 0x452   :  { %819 = vmatprep.subr.bf16.mxu1 %v952_v11 }
 0x51f   :  { %v167_v43 = vpop.f32.mrb[0].mxu1 }
 0x520   :  { %v173_v44 = vadd.f32 %v734_v42, %v167_v43  ;;  %v793_v45 = vpop.f32.mrb[1].mxu1 }
 0x521   :  { %v170_v46 = vpop.f32.mrb[2].mxu1 }
 0x522   :  { %872 = vtanh.f32 %v173_v44  ;;  %v794_v47 = vpop.f32.mrb[3].mxu1  ;;  %v174_v49 = vmul.f32 0.5, %v173_v44 }
 0x524   :  { %874 = vtanh.f32 %v174_v49 }
 0x52c   :  { %v873_v48 = vpop.eup %872 }
 0x52d   :  { %181 = vrot.lane.b32.xlu0 %v873_v48, %s951_s0 }
 0x52e   :  { %v875_v50 = vpop.eup %874 }
 0x52f   :  { %v176_v51 = vmul.f32 0.5, %v875_v50 }
 0x531   :  { %v177_v52 = vadd.f32 0.5, %v176_v51 }
 0x533   :  { %v179_v55 = vmul.f32 %v177_v52, %v115_v36 }
 0x59f   :  { %v182_v53 = vpop.permute.xlu0 %181 }
 0x5a0   :  { %v184_v54 = vmul.f32 %v182_v53, %v177_v52 }
 0x5a2   :  { %186 = vrot.lane.b32.xlu1 %v184_v54, %s955_s27 }
 0x614   :  { %v187_v56 = vpop.permute.xlu1 %186 }
 0x615   :  { %v189_v57 = vadd.f32 %v187_v56, %v179_v55 }
 0x617   :  { %876 = vtanh.f32 %v189_v57 }
 0x621   :  { %v877_v58 = vpop.eup %876 }
 0x622   :  { %192 = vrot.lane.b32.xlu0 %v877_v58, %s951_s0 }
 0x694   :  { %v193_v60 = vpop.permute.xlu0 %192 }
 0x695   :  { %v195_v61 = vmul.f32 %v193_v60, %v177_v52  ;;  %v743_v52 = vld [vmem:[%s723_s19 + $0x20] sm:$0x1] }
 0x697   :  { %v200_v62 = vpack.c.bf16 %v195_v61, %v195_v61  ;;  %v570_v63 = vrot.slane %v195_v61, 6 }
 0x699   :  { %v590_v1 = vsel %vm589_vm3, %v588_v0, %v570_v63  ;;  %202 = vrot.lane.b32.xlu1 %v200_v62, %s955_s27 }
 0x70b   :  { %v203_v2 = vpop.permute.xlu1 %202 }
 0x70c   :  { %800 = vmatmul.mubr.msk.bf16.vlgmr.msra.gmra.mrb[4].mxu0 %vm51_vm1, %v203_v2 }
 0x70d   :  { %812 = vmatpush3.bf16.msra.mxu0 %v990_v12  ;;  %815 = vmatprep.mubr.msk.bf16.mxu0 %vm953_vm0, %v952_v11 }
 0x70e   :  { %813 = vmatprep.subr.bf16.mxu0 %v952_v11 }
 0x711   :  { %814 = vmatpush3.bf16.msra.mxu0 %v1001_v14 }
 0x712   :  { %827 = vmatprep.subr.bf16.mxu0 %v952_v11 }
 0x7df   :  { %v241_v4 = vpop.f32.mrb[4].mxu0 }
 0x7e0   :  { %v247_v5 = vadd.f32 %v737_v3, %v241_v4  ;;  %v801_v6 = vpop.f32.mrb[5].mxu0 }
 0x7e1   :  { %v244_v7 = vpop.f32.mrb[6].mxu0 }
 0x7e2   :  { %878 = vtanh.f32 %v247_v5  ;;  %v802_v8 = vpop.f32.mrb[7].mxu0  ;;  %v248_v10 = vmul.f32 0.5, %v247_v5 }
 0x7e4   :  { %880 = vtanh.f32 %v248_v10 }
 0x7ec   :  { %v879_v9 = vpop.eup %878 }
 0x7ed   :  { %255 = vrot.lane.b32.xlu0 %v879_v9, %s951_s0  ;;  %v746_v9 = vld [vmem:[%s725_s23 + $0x20] sm:$0x1] }
 0x7ee   :  { %v881_v13 = vpop.eup %880 }
 0x7ef   :  { %v250_v15 = vmul.f32 0.5, %v881_v13 }
 0x7f1   :  { %v251_v16 = vadd.f32 0.5, %v250_v15 }
 0x7f3   :  { %v253_v19 = vmul.f32 %v251_v16, %v189_v57 }
 0x85f   :  { %v256_v17 = vpop.permute.xlu0 %255 }
 0x860   :  { %v258_v18 = vmul.f32 %v256_v17, %v251_v16 }
 0x862   :  { %260 = vrot.lane.b32.xlu1 %v258_v18, %s955_s27 }
 0x8d4   :  { %v261_v20 = vpop.permute.xlu1 %260 }
 0x8d5   :  { %v263_v21 = vadd.f32 %v261_v20, %v253_v19 }
 0x8d7   :  { %882 = vtanh.f32 %v263_v21 }
 0x8e1   :  { %v883_v22 = vpop.eup %882 }
 0x8e2   :  { %266 = vrot.lane.b32.xlu0 %v883_v22, %s951_s0 }
 0x954   :  { %v267_v23 = vpop.permute.xlu0 %266 }
 0x955   :  { %v269_v24 = vmul.f32 %v267_v23, %v251_v16 }
 0x957   :  { %v274_v25 = vpack.c.bf16 %v269_v24, %v269_v24  ;;  %v573_v26 = vrot.slane %v269_v24, 5 }
 0x959   :  { %v592_v27 = vsel %vm591_vm4, %v590_v1, %v573_v26  ;;  %276 = vrot.lane.b32.xlu1 %v274_v25, %s955_s27 }
 0x9cb   :  { %v277_v28 = vpop.permute.xlu1 %276 }
 0x9cc   :  { %808 = vmatmul.mubr.msk.bf16.vlgmr.msra.gmra.mrb[4].mxu1 %vm51_vm1, %v277_v28 }
 0x9cd   :  { %820 = vmatpush3.bf16.msra.mxu1 %v990_v12  ;;  %823 = vmatprep.mubr.msk.bf16.mxu1 %vm953_vm0, %v952_v11 }
 0x9ce   :  { %821 = vmatprep.subr.bf16.mxu1 %v952_v11 }
 0x9d1   :  { %822 = vmatpush3.bf16.msra.mxu1 %v1001_v14 }
 0xa9f   :  { %v315_v30 = vpop.f32.mrb[4].mxu1 }
 0xaa0   :  { %v321_v31 = vadd.f32 %v740_v29, %v315_v30  ;;  %v809_v32 = vpop.f32.mrb[5].mxu1 }
 0xaa1   :  { %v318_v33 = vpop.f32.mrb[6].mxu1 }
 0xaa2   :  { %884 = vtanh.f32 %v321_v31  ;;  %v810_v34 = vpop.f32.mrb[7].mxu1  ;;  %v322_v36 = vmul.f32 0.5, %v321_v31 }
 0xaa3   :  { %v749_v34 = vld [vmem:[%s727_s28 + $0x20] sm:$0x1] }
 0xaa4   :  { %886 = vtanh.f32 %v322_v36 }
 0xaac   :  { %v885_v35 = vpop.eup %884 }
 0xaad   :  { %329 = vrot.lane.b32.xlu0 %v885_v35, %s951_s0 }
 0xaae   :  { %v887_v37 = vpop.eup %886 }
 0xaaf   :  { %v324_v38 = vmul.f32 0.5, %v887_v37 }
 0xab1   :  { %v325_v39 = vadd.f32 0.5, %v324_v38 }
 0xab3   :  { %v327_v42 = vmul.f32 %v325_v39, %v263_v21 }
 0xb1f   :  { %v330_v40 = vpop.permute.xlu0 %329 }
 0xb20   :  { %v332_v41 = vmul.f32 %v330_v40, %v325_v39 }
 0xb22   :  { %334 = vrot.lane.b32.xlu1 %v332_v41, %s955_s27 }
 0xb94   :  { %v335_v43 = vpop.permute.xlu1 %334 }
 0xb95   :  { %v337_v44 = vadd.f32 %v335_v43, %v327_v42 }
 0xb97   :  { %888 = vtanh.f32 %v337_v44 }
 0xba1   :  { %v889_v45 = vpop.eup %888 }
 0xba2   :  { %340 = vrot.lane.b32.xlu0 %v889_v45, %s951_s0 }
 0xc14   :  { %v341_v46 = vpop.permute.xlu0 %340 }
 0xc15   :  { %v343_v47 = vmul.f32 %v341_v46, %v325_v39 }
 0xc17   :  { %v348_v48 = vpack.c.bf16 %v343_v47, %v343_v47  ;;  %v576_v49 = vrot.slane %v343_v47, 4 }
 0xc19   :  { %v594_v50 = vsel %vm593_vm5, %v592_v27, %v576_v49  ;;  %350 = vrot.lane.b32.xlu1 %v348_v48, %s955_s27 }
 0xc8b   :  { %v351_v51 = vpop.permute.xlu1 %350 }
 0xc8c   :  { %816 = vmatmul.mubr.msk.bf16.vlgmr.msra.gmra.mrb[8].mxu0 %vm51_vm1, %v351_v51  ;;  %v602_v51 = vld [vmem:[%s1135_s1 + $0x40] sm:$0xff] }
 0xc8d   :  { %828 = vmatpush3.bf16.msra.mxu0 %v990_v12  ;;  %831 = vmatprep.mubr.msk.bf16.mxu0 %vm953_vm0, %v952_v11 }
 0xc8e   :  { %829 = vmatprep.subr.bf16.mxu0 %v952_v11 }
 0xc91   :  { %830 = vmatpush3.bf16.msra.mxu0 %v1001_v14 }
 0xd5f   :  { %v389_v53 = vpop.f32.mrb[8].mxu0 }
 0xd60   :  { %v395_v54 = vadd.f32 %v743_v52, %v389_v53  ;;  %v817_v55 = vpop.f32.mrb[9].mxu0  ;;  %v603_v52 = vld [vmem:[%s1135_s1 + $0x48] sm:$0xff]  ;;  %v956_v53 = vmov 0.0|0.0  }
 0xd61   :  { %v392_v56 = vpop.f32.mrb[10].mxu0  ;;  %846 = vmatprep.subr.bf16.mxu1 %v956_v53  ;;  %v604_v55 = vld [vmem:[%s1135_s1 + $0x50] sm:$0xff] }
 0xd62   :  { %890 = vtanh.f32 %v395_v54  ;;  %v818_v57 = vpop.f32.mrb[11].mxu0  ;;  %v396_v58 = vmul.f32 0.5, %v395_v54  ;;  %v850_v56 = vpack.c.bf16 %v604_v55, %v603_v52 }
 0xd64   :  { %892 = vtanh.f32 %v396_v58 }
 0xd6c   :  { %v891_v12 = vpop.eup %890 }
 0xd6d   :  { %403 = vrot.lane.b32.xlu0 %v891_v12, %s951_s0 }
 0xd6e   :  { %v893_v59 = vpop.eup %892 }
 0xd6f   :  { %v398_v60 = vmul.f32 0.5, %v893_v59 }
 0xd71   :  { %v399_v14 = vadd.f32 0.5, %v398_v60 }
 0xd73   :  { %v401_v63 = vmul.f32 %v399_v14, %v337_v44 }
 0xddf   :  { %v404_v61 = vpop.permute.xlu0 %403 }
 0xde0   :  { %v406_v62 = vmul.f32 %v404_v61, %v399_v14  ;;  %v751_v61 = vld [vmem:[%s1135_s1 + $0x58] ss:$0 sm:$0xff] }
 0xde2   :  { %408 = vrot.lane.b32.xlu1 %v406_v62, %s955_s27 }
 0xe54   :  { %v409_v0 = vpop.permute.xlu1 %408 }
 0xe55   :  { %v411_v1 = vadd.f32 %v409_v0, %v401_v63 }
 0xe57   :  { %894 = vtanh.f32 %v411_v1 }
 0xe61   :  { %v895_v2 = vpop.eup %894 }
 0xe62   :  { %414 = vrot.lane.b32.xlu0 %v895_v2, %s951_s0 }
 0xed4   :  { %v415_v3 = vpop.permute.xlu0 %414 }
 0xed5   :  { %v417_v4 = vmul.f32 %v415_v3, %v399_v14 }
 0xed7   :  { %v422_v5 = vpack.c.bf16 %v417_v4, %v417_v4  ;;  %v579_v6 = vrot.slane %v417_v4, 3 }
 0xed9   :  { %424 = vrot.lane.b32.xlu1 %v422_v5, %s955_s27  ;;  %v596_v7 = vsel %vm595_vm6, %v594_v50, %v579_v6  ;;  %v601_v50 = vld [vmem:[%s1135_s1 + $0x38] sm:$0xff] }
 0xeda   :  { %v847_v54 = vpack.c.bf16 %v602_v51, %v601_v50 }
 0xf4b   :  { %v425_v8 = vpop.permute.xlu1 %424 }
 0xf4c   :  { %824 = vmatmul.mubr.msk.bf16.vlgmr.msra.gmra.mrb[8].mxu1 %vm51_vm1, %v425_v8 }
 0xf4d   :  { %843 = vmatprep.mubr.msk.f32.mxu1 %vm953_vm0, %v952_v11  ;;  %848 = vmatpush3.bf16.msra.mxu1 %v847_v54 }
 0xf4e   :  { %849 = vmatprep.subr.bf16.mxu1 %v956_v53 }
 0xf51   :  { %851 = vmatpush3.bf16.msra.mxu1 %v850_v56 }
0x101f   :  { %v463_v10 = vpop.f32.mrb[8].mxu1 }
0x1020   :  { %v469_v13 = vadd.f32 %v746_v9, %v463_v10  ;;  %v825_v15 = vpop.f32.mrb[9].mxu1 }
0x1021   :  { %v466_v16 = vpop.f32.mrb[10].mxu1 }
0x1022   :  { %896 = vtanh.f32 %v469_v13  ;;  %v826_v17 = vpop.f32.mrb[11].mxu1  ;;  %v470_v19 = vmul.f32 0.5, %v469_v13 }
0x1024   :  { %898 = vtanh.f32 %v470_v19 }
0x102c   :  { %v897_v18 = vpop.eup %896 }
0x102d   :  { %477 = vrot.lane.b32.xlu0 %v897_v18, %s951_s0 }
0x102e   :  { %v899_v20 = vpop.eup %898 }
0x102f   :  { %v472_v21 = vmul.f32 0.5, %v899_v20 }
0x1031   :  { %v473_v11 = vadd.f32 0.5, %v472_v21 }
0x1033   :  { %v475_v24 = vmul.f32 %v473_v11, %v411_v1 }
0x109f   :  { %v478_v22 = vpop.permute.xlu0 %477 }
0x10a0   :  { %v480_v23 = vmul.f32 %v478_v22, %v473_v11 }
0x10a2   :  { %482 = vrot.lane.b32.xlu1 %v480_v23, %s955_s27 }
0x1114   :  { %v483_v25 = vpop.permute.xlu1 %482 }
0x1115   :  { %v485_v26 = vadd.f32 %v483_v25, %v475_v24 }
0x1117   :  { %900 = vtanh.f32 %v485_v26 }
0x1121   :  { %v901_v27 = vpop.eup %900 }
0x1122   :  { %488 = vrot.lane.b32.xlu0 %v901_v27, %s951_s0 }
0x1194   :  { %v489_v28 = vpop.permute.xlu0 %488 }
0x1195   :  { %v491_v29 = vmul.f32 %v489_v28, %v473_v11 }
0x1197   :  { %v496_v30 = vpack.c.bf16 %v491_v29, %v491_v29  ;;  %v582_v31 = vrot.slane %v491_v29, 2 }
0x1199   :  { %498 = vrot.lane.b32.xlu1 %v496_v30, %s955_s27  ;;  %v598_v32 = vsel %vm597_vm7, %v596_v7, %v582_v31 }
0x120b   :  { %v499_v33 = vpop.permute.xlu1 %498 }
0x120c   :  { %832 = vmatmul.mubr.msk.bf16.vlgmr.msra.gmra.mrb[12].mxu0 %vm51_vm1, %v499_v33 }
0x12df   :  { %v537_v35 = vpop.f32.mrb[12].mxu0 }
0x12e0   :  { %v543_v36 = vadd.f32 %v749_v34, %v537_v35  ;;  %v833_v37 = vpop.f32.mrb[13].mxu0 }
0x12e1   :  { %v540_v38 = vpop.f32.mrb[14].mxu0 }
0x12e2   :  { %902 = vtanh.f32 %v543_v36  ;;  %v834_v39 = vpop.f32.mrb[15].mxu0  ;;  %v544_v41 = vmul.f32 0.5, %v543_v36 }
0x12e4   :  { %904 = vtanh.f32 %v544_v41 }
0x12ec   :  { %v903_v40 = vpop.eup %902 }
0x12ed   :  { %551 = vrot.lane.b32.xlu0 %v903_v40, %s951_s0 }
0x12ee   :  { %v905_v42 = vpop.eup %904 }
0x12ef   :  { %v546_v43 = vmul.f32 0.5, %v905_v42 }
0x12f1   :  { %v547_v44 = vadd.f32 0.5, %v546_v43 }
0x12f3   :  { %v549_v47 = vmul.f32 %v547_v44, %v485_v26 }
0x135f   :  { %v552_v45 = vpop.permute.xlu0 %551 }
0x1360   :  { %v554_v46 = vmul.f32 %v552_v45, %v547_v44 }
0x1362   :  { %556 = vrot.lane.b32.xlu1 %v554_v46, %s955_s27 }
0x13d4   :  { %v557_v48 = vpop.permute.xlu1 %556 }
0x13d5   :  { %v559_v49 = vadd.f32 %v557_v48, %v549_v47 }
0x13d7   :  { %906 = vtanh.f32 %v559_v49 }
0x13e1   :  { %v907_v57 = vpop.eup %906 }
0x13e2   :  { %562 = vrot.lane.b32.xlu0 %v907_v57, %s951_s0  ;;  %s957_s0 = smov [#allocation4]  }
0x13e3   :  { %s705_s1 = sshll.u32 %s957_s0, 4  ;;  %s706_s1 = int_to_ptr.vmem [resolvable:$true] %s705_s1 }
0x13e4   :  { %p929_p6 = scmp.lt.s32.totalorder %s706_s1, %s706_s1 }
0x1454   :  { %v563_v12 = vpop.permute.xlu0 %562 }
0x1455   :  { %v565_v58 = vmul.f32 %v563_v12, %v547_v44 }
0x1457   :  { %v585_v59 = vrot.slane %v565_v58, 1 }
0x1459   :  { %v600_v60 = vsel %vm599_vm8, %v598_v32, %v585_v59 }
0x145a   :  { %611 = vrot.lane.b32.xlu1 %v600_v60, %s955_s27  ;;  %s924_s27 = scalar_lea.vmem %s706_s1, 128 }
0x145b   :  { %p925_p5 = scmp.ne.s32.totalorder %s706_s1, %s924_s27  ;;  %p930_p7 = scmp.lt.s32.totalorder %s924_s27, %s924_s27 }
0x145d   :  { %p931_p8 = por %p930_p7, %p929_p6 }
0x145f   :  { %p932_p9 = pnand %p931_p8, %p925_p5 }
0x14cc   :  { %v612_v14 = vpop.permute.xlu1 %611 }
0x14cd   :  { %844 = vmatmul.mubr.msk.f32.vlgmr.msra.gmra.mrb[12].mxu1 %vm51_vm1, %v612_v14 }
0x15a0   :  { %v681_v62 = vpop.f32.mrb[12].mxu1 }
0x15a1   :  { %v682_v63 = vadd.f32 %v751_v61, %v681_v62  ;;  %v845_v0 = vpop.f32.mrb[13].mxu1 }
0x15a3   :  { %v686_v1 = vsel %vm685_vm9, %v682_v63, -inf }
0x15a4   :  { %687 = vmax.xlane.f32.xlu0 %v686_v1 }
0x1631   :  { %v688_v2 = vpop.xlane.xlu0 %687 }
0x1632   :  { %v689_v3 = vsub.f32 %v682_v63, %v688_v2 }
0x1634   :  { %v690_v4 = vmul.f32 1.442695, %v689_v3 }
0x1636   :  { %908 = vpow2.f32 %v690_v4 }
0x1640   :  { %v909_v5 = vpop.eup %908 }
0x1641   :  { %v692_v6 = vsel %vm685_vm9, %v909_v5, 0.0 }
0x1642   :  { %693 = vadd.xlane.f32.xlu1 %v692_v6 }
0x16cf   :  { %v694_v7 = vpop.xlane.xlu1 %693 }
0x16d0   :  { %910 = vlog2.f32 %v694_v7 }
0x16da   :  { %v911_v8 = vpop.eup %910 }
0x16db   :  { %v696_v9 = vmul.f32 0.6931472, %v911_v8 }
0x16dd   :  { %v697_v10 = vsub.f32 %v689_v3, %v696_v9 }
0x16df   :  { %698 = vst.msk [vmem:[#allocation4] sm:$0xff] %vm685_vm9, %v697_v10 }
0x16e0   :  { %935 = shalt.err (!%p932_p9)
}
0x16e1   :  { %s936_s13 = scalar_lea.hbm %s1136_s2, 128 }
0x16e2   :  { %p937_p10 = scmp.ne.s32.totalorder %s1136_s2, %s936_s13  ;;  %p940_p11 = scmp.lt.u32.totalorder %s936_s13, %s1136_s2 }
0x16e4   :  { %p942_p12 = pnand %p940_p11, %p937_p10 }
0x16e6   :  { %945 = shalt.err (!%p942_p12)
}
0x16e7   :  { %708 = dma.vmem_to_hbm [thread:$0]  %s706_s1, 128, %s1136_s2, [#allocation5]  }
0x16e8   :  { %948 = dma.done.wait [#allocation5], 128  }
0x16e9   :  { %949 = vsyncadd [#allocation5], 4294967168 }
0x16ea   :  { %712 = vsyncpa [#allocation5], 1 }

</bundles_post_ra>
